<compile_context>
chip_gen: v6e
topology: v6e:2x2x1
jax: 0.10.0
libtpu: 0.0.40
codegen_flags: <defaults>
</compile_context>

<pallas_src>
import functools
import math

import jax
import jax.numpy as jnp
from jax.experimental import pallas as pl
from jax.experimental.pallas import tpu as pltpu

# ----------------------------- model config ---------------------------------
OUT_SIZE   = 32   # embedding / residual dim (E)
KEY_SIZE   = 16
VALUE_SIZE = 16
NUM_HEADS  = 4
B          = 2    # batch
NQ         = 8    # number of queries
NK         = 8    # number of keys
LN_EPS     = 1e-5 # torch.nn.LayerNorm default

HK = NUM_HEADS * KEY_SIZE      # 64
HV = NUM_HEADS * VALUE_SIZE    # 64
PW = max(HK, HV, OUT_SIZE)     # 64 = lane width of the packed parameter slab


# ------------------------------ Pallas kernel --------------------------------
def _attention_layer_kernel(
    q_ref,      # (B*Nq, E)   float32
    k_ref,      # (B*Nk, E)
    v_ref,      # (B*Nk, E)
    p_ref,      # (3*E + HV + 6, PW)  packed parameter slab (see pack_params)
    o_ref,      # (B*Nq, E)
    *, batch, nq, nk, num_heads, key_size, value_size,
):
    E = q_ref.shape[-1]
    hk = num_heads * key_size
    hv = num_heads * value_size

    q_in = q_ref[...]                        # (B*Nq, E)
    k_in = k_ref[...]                        # (B*Nk, E)
    v_in = v_ref[...]                        # (B*Nk, E)

    # --- parameter slab (static, sublane-aligned ref views) ------------------
    # rows [0:E)        Wq * sqrt(Dk)
    # rows [E:2E)       Wk
    # rows [2E:3E)      Wv
    # rows [3E:3E+hv)   Wo (lane-padded; only first E lanes meaningful)
    # rows [3E+hv + i)  bias rows: bq*sqrt(Dk), bk, bv, bo, ln_g, ln_b
    r_wo = 3 * E
    r_b = r_wo + hv
    Wq = p_ref[0:E, :hk]
    Wk = p_ref[E:2 * E, :hk]
    Wv = p_ref[2 * E:3 * E, :hv]
    Wo = p_ref[r_wo:r_wo + hv, :E]
    bq = p_ref[r_b + 0:r_b + 1, :hk]
    bk = p_ref[r_b + 1:r_b + 2, :hk]
    bv = p_ref[r_b + 2:r_b + 3, :hv]
    bo = p_ref[r_b + 3:r_b + 4, :E]
    ln_g = p_ref[r_b + 4:r_b + 5, :E]
    ln_b = p_ref[r_b + 5:r_b + 6, :E]

    # --- projections on the MXU (batch folded into rows) ---------------------
    # Wq / bq already carry the sqrt(Dk) score scale.
    Q = jnp.dot(q_in, Wq, preferred_element_type=jnp.float32) + bq   # (B*Nq, hk)
    K = jnp.dot(k_in, Wk, preferred_element_type=jnp.float32) + bk   # (B*Nk, hk)
    V = jnp.dot(v_in, Wv, preferred_element_type=jnp.float32) + bv   # (B*Nk, hv)

    for b in range(batch):                   # static, tiny batch loop
        Qb = Q[b * nq:(b + 1) * nq, :]       # (Nq, hk)  8-row aligned value slice
        Kb = K[b * nk:(b + 1) * nk, :]       # (Nk, hk)
        Vb = V[b * nk:(b + 1) * nk, :]       # (Nk, hv)

        head_outs = []
        for h in range(num_heads):           # static head loop
            Qh = Qb[:, h * key_size:(h + 1) * key_size]       # (Nq, Dk)
            Kh = Kb[:, h * key_size:(h + 1) * key_size]       # (Nk, Dk)
            Vh = Vb[:, h * value_size:(h + 1) * value_size]   # (Nk, Dv)

            # contract last dims directly on the MXU (no in-kernel transpose)
            att = jax.lax.dot_general(
                Qh, Kh, (((1,), (1,)), ((), ())),
                preferred_element_type=jnp.float32)           # (Nq, Nk)

            # numerically-stable softmax over keys (exact divide; kernel is
            # overhead-bound so the approximate reciprocal bought nothing)
            att_max = jnp.max(att, axis=-1, keepdims=True)
            p = jnp.exp(att - att_max)
            p = p / jnp.sum(p, axis=-1, keepdims=True)

            head_outs.append(
                jnp.dot(p, Vh, preferred_element_type=jnp.float32))   # (Nq, Dv)

        # concat heads along lanes (4x(Nq,16) -> (Nq,64), still one vreg row set)
        # and do ONE output-projection matmul with the full Wo.
        heads_cat = (head_outs[0] if num_heads == 1
                     else jnp.concatenate(head_outs, axis=-1))        # (Nq, hv)
        att_out = jnp.dot(heads_cat, Wo,
                          preferred_element_type=jnp.float32) + bo    # (Nq, E)

        # dropout (inference) is identity; residual + LayerNorm over last dim,
        # stored directly into the matching 8-row output slice (no batch concat).
        resid = att_out + q_in[b * nq:(b + 1) * nq, :]
        mean = jnp.mean(resid, axis=-1, keepdims=True)
        var = jnp.mean((resid - mean) ** 2, axis=-1, keepdims=True)
        normed = (resid - mean) * jax.lax.rsqrt(var + LN_EPS)
        o_ref[b * nq:(b + 1) * nq, :] = normed * ln_g + ln_b


# ------------------------------ host wrapper ---------------------------------
def pack_params(params):
    """One-time packing of all parameters into a single (3E+HV+6, PW) slab.

    Also folds the sqrt(key_size) score scale into Wq / bq (the reference module
    multiplies scores by sqrt(key_size)).  NOTE: valid only because Q is used
    exclusively for attention scores."""
    sd = math.sqrt(KEY_SIZE)

    def padw(x):
        return jnp.pad(x, ((0, 0), (0, PW - x.shape[1])))

    slab = jnp.concatenate(
        [
            padw(params["wq"] * sd),   # (E, PW)
            padw(params["wk"]),        # (E, PW)
            padw(params["wv"]),        # (E, PW)
            padw(params["wo"]),        # (HV, PW)
            padw(params["bq"] * sd),   # (1, PW)
            padw(params["bk"]),
            padw(params["bv"]),
            padw(params["bo"]),
            padw(params["ln_g"]),
            padw(params["ln_b"]),
        ],
        axis=0,
    )                                   # (3E + HV + 6, PW) = (166, 64)
    return slab


@jax.jit
def attention_layer(queries, keys, values, param_slab):
    B_, Nq, E = queries.shape
    _, Nk, _ = keys.shape
    assert Nq % 8 == 0 and Nk % 8 == 0, "kernel assumes sublane-aligned seq lengths"
    assert E == OUT_SIZE

    # free metadata reshapes: fold batch into rows (do NOT stack q/k/v -> copy)
    q2 = queries.reshape(B_ * Nq, E)
    k2 = keys.reshape(B_ * Nk, E)
    v2 = values.reshape(B_ * Nk, E)

    kernel = functools.partial(
        _attention_layer_kernel,
        batch=B_, nq=Nq, nk=Nk,
        num_heads=NUM_HEADS, key_size=KEY_SIZE, value_size=VALUE_SIZE,
    )

    vmem = pl.BlockSpec(memory_space=pltpu.MemorySpace.VMEM)
    out2 = pl.pallas_call(
        kernel,
        out_shape=jax.ShapeDtypeStruct((B_ * Nq, E), jnp.float32),
        in_specs=[vmem] * 4,
        out_specs=vmem,
    )(q2, k2, v2, param_slab)

    return out2.reshape(B_, Nq, E)


# --------------------------- parameter initialization ------------------------
def init_params(key):
    E = OUT_SIZE
    ks = jax.random.split(key, 5)

    def xavier_uniform(k, fan_in, fan_out):
        a = math.sqrt(6.0 / (fan_in + fan_out))
        return jax.random.uniform(k, (fan_in, fan_out), jnp.float32, -a, a)

    def xavier_normal(k, fan_in, fan_out):
        std = math.sqrt(2.0 / (fan_in + fan_out))
        return jax.random.normal(k, (fan_in, fan_out), jnp.float32) * std

    # weights stored transposed vs torch: (in_features, out_features)
    bound_o = 1.0 / math.sqrt(HV)   # torch Linear default bias init for `output`
    return {
        "wq": xavier_uniform(ks[0], E, HK), "bq": jnp.zeros((1, HK), jnp.float32),
        "wk": xavier_uniform(ks[1], E, HK), "bk": jnp.zeros((1, HK), jnp.float32),
        "wv": xavier_normal(ks[2], E, HV),  "bv": jnp.zeros((1, HV), jnp.float32),
        "wo": xavier_uniform(ks[3], HV, E),
        "bo": jax.random.uniform(ks[4], (1, E), jnp.float32, -bound_o, bound_o),
        "ln_g": jnp.ones((1, E), jnp.float32),
        "ln_b": jnp.zeros((1, E), jnp.float32),
    }


# ------------------------------- JAX reference --------------------------------
def reference(queries, keys, values, p):
    Q = queries @ p["wq"] + p["bq"][0]
    K = keys @ p["wk"] + p["bk"][0]
    V = values @ p["wv"] + p["bv"][0]
    B_, Nq, _ = queries.shape
    Nk = keys.shape[1]
    Q = Q.reshape(B_, Nq, NUM_HEADS, KEY_SIZE).transpose(0, 2, 1, 3)
    K = K.reshape(B_, Nk, NUM_HEADS, KEY_SIZE).transpose(0, 2, 3, 1)
    V = V.reshape(B_, Nk, NUM_HEADS, VALUE_SIZE).transpose(0, 2, 1, 3)
    att = jnp.matmul(Q, K) * math.sqrt(KEY_SIZE)   # torch: att / (1/sqrt(Dk))
    att = jax.nn.softmax(att, axis=-1)
    out = jnp.matmul(att, V).transpose(0, 2, 1, 3).reshape(B_, Nq, NUM_HEADS * VALUE_SIZE)
    out = out @ p["wo"] + p["bo"][0]
    resid = out + queries
    mean = resid.mean(-1, keepdims=True)
    var = ((resid - mean) ** 2).mean(-1, keepdims=True)
    return (resid - mean) / jnp.sqrt(var + LN_EPS) * p["ln_g"][0] + p["ln_b"][0]


# ----------------------------------- main -------------------------------------
if __name__ == "__main__":
    key = jax.random.PRNGKey(0)
    kq, kk, kv, kp = jax.random.split(key, 4)
    queries = jax.random.normal(kq, (B, NQ, OUT_SIZE), jnp.float32)
    keys = jax.random.normal(kk, (B, NK, OUT_SIZE), jnp.float32)
    values = jax.random.normal(kv, (B, NK, OUT_SIZE), jnp.float32)
    params = init_params(kp)
    param_slab = pack_params(params)       # one-time packing / scale folding

    out = attention_layer(queries, keys, values, param_slab)
    out = jax.block_until_ready(out)

    ref = reference(queries, keys, values, params)
    assert out.shape == (B, NQ, OUT_SIZE)
    assert jnp.allclose(out, ref, atol=1e-4, rtol=1e-4), "mismatch vs JAX reference"

    print("KERNEL_OK")
</pallas_src>

<mosaic_0001>
module attributes {stable_mosaic.version = 11 : i64} {
  func.func @_attention_layer_kernel(%arg0: memref<16x32xf32, #tpu.memory_space<vmem>>, %arg1: memref<16x32xf32, #tpu.memory_space<vmem>>, %arg2: memref<16x32xf32, #tpu.memory_space<vmem>>, %arg3: memref<166x64xf32, #tpu.memory_space<vmem>>, %arg4: memref<16x32xf32, #tpu.memory_space<vmem>>) attributes {dimension_semantics = [], scalar_prefetch = 0 : i64, scratch_operands = 0 : i64, tpu.core_type = #tpu.core_type<tc>} {
    %c0 = arith.constant 0 : index
    %c0_0 = arith.constant 0 : index
    %0 = vector.load %arg0[%c0, %c0_0] : memref<16x32xf32, #tpu.memory_space<vmem>>, vector<16x32xf32>
    %c0_1 = arith.constant 0 : index
    %c0_2 = arith.constant 0 : index
    %1 = vector.load %arg1[%c0_1, %c0_2] : memref<16x32xf32, #tpu.memory_space<vmem>>, vector<16x32xf32>
    %c0_3 = arith.constant 0 : index
    %c0_4 = arith.constant 0 : index
    %2 = vector.load %arg2[%c0_3, %c0_4] : memref<16x32xf32, #tpu.memory_space<vmem>>, vector<16x32xf32>
    %c0_5 = arith.constant 0 : index
    %c0_6 = arith.constant 0 : index
    %3 = vector.load %arg3[%c0_5, %c0_6] : memref<166x64xf32, #tpu.memory_space<vmem>>, vector<32x64xf32>
    %c32 = arith.constant 32 : index
    %c0_7 = arith.constant 0 : index
    %4 = vector.load %arg3[%c32, %c0_7] : memref<166x64xf32, #tpu.memory_space<vmem>>, vector<32x64xf32>
    %c64 = arith.constant 64 : index
    %c0_8 = arith.constant 0 : index
    %5 = vector.load %arg3[%c64, %c0_8] : memref<166x64xf32, #tpu.memory_space<vmem>>, vector<32x64xf32>
    %c96 = arith.constant 96 : index
    %c0_9 = arith.constant 0 : index
    %6 = vector.load %arg3[%c96, %c0_9] : memref<166x64xf32, #tpu.memory_space<vmem>>, vector<64x32xf32>
    %c160 = arith.constant 160 : index
    %c0_10 = arith.constant 0 : index
    %7 = vector.load %arg3[%c160, %c0_10] : memref<166x64xf32, #tpu.memory_space<vmem>>, vector<1x64xf32>
    %c161 = arith.constant 161 : index
    %c0_11 = arith.constant 0 : index
    %8 = vector.load %arg3[%c161, %c0_11] : memref<166x64xf32, #tpu.memory_space<vmem>>, vector<1x64xf32>
    %c162 = arith.constant 162 : index
    %c0_12 = arith.constant 0 : index
    %9 = vector.load %arg3[%c162, %c0_12] : memref<166x64xf32, #tpu.memory_space<vmem>>, vector<1x64xf32>
    %c163 = arith.constant 163 : index
    %c0_13 = arith.constant 0 : index
    %10 = vector.load %arg3[%c163, %c0_13] : memref<166x64xf32, #tpu.memory_space<vmem>>, vector<1x32xf32>
    %c164 = arith.constant 164 : index
    %c0_14 = arith.constant 0 : index
    %11 = vector.load %arg3[%c164, %c0_14] : memref<166x64xf32, #tpu.memory_space<vmem>>, vector<1x32xf32>
    %c165 = arith.constant 165 : index
    %c0_15 = arith.constant 0 : index
    %12 = vector.load %arg3[%c165, %c0_15] : memref<166x64xf32, #tpu.memory_space<vmem>>, vector<1x32xf32>
    %cst = arith.constant dense<0.000000e+00> : vector<16x64xf32>
    %13 = tpu.matmul %0, %3, %cst {dimension_numbers = #tpu.dot_dimension_numbers<[1], [0], [0], [1], [0, 0, 1, 1], [], []>} : vector<16x32xf32>, vector<32x64xf32>, vector<16x64xf32> -> vector<16x64xf32>
    %14 = vector.broadcast %7 : vector<1x64xf32> to vector<16x64xf32>
    %15 = arith.addf %13, %14 : vector<16x64xf32>
    %cst_16 = arith.constant dense<0.000000e+00> : vector<16x64xf32>
    %16 = tpu.matmul %1, %4, %cst_16 {dimension_numbers = #tpu.dot_dimension_numbers<[1], [0], [0], [1], [0, 0, 1, 1], [], []>} : vector<16x32xf32>, vector<32x64xf32>, vector<16x64xf32> -> vector<16x64xf32>
    %17 = vector.broadcast %8 : vector<1x64xf32> to vector<16x64xf32>
    %18 = arith.addf %16, %17 : vector<16x64xf32>
    %cst_17 = arith.constant dense<0.000000e+00> : vector<16x64xf32>
    %19 = tpu.matmul %2, %5, %cst_17 {dimension_numbers = #tpu.dot_dimension_numbers<[1], [0], [0], [1], [0, 0, 1, 1], [], []>} : vector<16x32xf32>, vector<32x64xf32>, vector<16x64xf32> -> vector<16x64xf32>
    %20 = vector.broadcast %9 : vector<1x64xf32> to vector<16x64xf32>
    %21 = arith.addf %19, %20 : vector<16x64xf32>
    %22 = vector.extract_strided_slice %15 {offsets = [0, 0], sizes = [8, 64], strides = [1, 1]} : vector<16x64xf32> to vector<8x64xf32>
    %23 = vector.extract_strided_slice %18 {offsets = [0, 0], sizes = [8, 64], strides = [1, 1]} : vector<16x64xf32> to vector<8x64xf32>
    %24 = vector.extract_strided_slice %21 {offsets = [0, 0], sizes = [8, 64], strides = [1, 1]} : vector<16x64xf32> to vector<8x64xf32>
    %25 = vector.extract_strided_slice %22 {offsets = [0, 0], sizes = [8, 16], strides = [1, 1]} : vector<8x64xf32> to vector<8x16xf32>
    %26 = vector.extract_strided_slice %23 {offsets = [0, 0], sizes = [8, 16], strides = [1, 1]} : vector<8x64xf32> to vector<8x16xf32>
    %27 = vector.extract_strided_slice %24 {offsets = [0, 0], sizes = [8, 16], strides = [1, 1]} : vector<8x64xf32> to vector<8x16xf32>
    %cst_18 = arith.constant dense<0.000000e+00> : vector<8x8xf32>
    %28 = tpu.matmul %25, %26, %cst_18 {dimension_numbers = #tpu.dot_dimension_numbers<[1], [1], [0], [0], [0, 0, 1, 0], [], []>} : vector<8x16xf32>, vector<8x16xf32>, vector<8x8xf32> -> vector<8x8xf32>
    %cst_19 = arith.constant dense<0xFF800000> : vector<8xf32>
    %29 = vector.multi_reduction <maximumf>, %28, %cst_19 [1] : vector<8x8xf32> to vector<8xf32>
    %30 = vector.shape_cast %29 : vector<8xf32> to vector<8x1xf32>
    %31 = vector.broadcast %30 : vector<8x1xf32> to vector<8x8xf32>
    %32 = arith.subf %28, %31 : vector<8x8xf32>
    %33 = math.exp %32 : vector<8x8xf32>
    %cst_20 = arith.constant dense<0.000000e+00> : vector<8xf32>
    %34 = vector.multi_reduction <add>, %33, %cst_20 [1] : vector<8x8xf32> to vector<8xf32>
    %35 = vector.shape_cast %34 : vector<8xf32> to vector<8x1xf32>
    %36 = vector.broadcast %35 : vector<8x1xf32> to vector<8x8xf32>
    %37 = arith.divf %33, %36 : vector<8x8xf32>
    %cst_21 = arith.constant dense<0.000000e+00> : vector<8x16xf32>
    %38 = tpu.matmul %37, %27, %cst_21 {dimension_numbers = #tpu.dot_dimension_numbers<[1], [0], [0], [1], [0, 0, 1, 1], [], []>} : vector<8x8xf32>, vector<8x16xf32>, vector<8x16xf32> -> vector<8x16xf32>
    %39 = vector.extract_strided_slice %22 {offsets = [0, 16], sizes = [8, 16], strides = [1, 1]} : vector<8x64xf32> to vector<8x16xf32>
    %40 = vector.extract_strided_slice %23 {offsets = [0, 16], sizes = [8, 16], strides = [1, 1]} : vector<8x64xf32> to vector<8x16xf32>
    %41 = vector.extract_strided_slice %24 {offsets = [0, 16], sizes = [8, 16], strides = [1, 1]} : vector<8x64xf32> to vector<8x16xf32>
    %cst_22 = arith.constant dense<0.000000e+00> : vector<8x8xf32>
    %42 = tpu.matmul %39, %40, %cst_22 {dimension_numbers = #tpu.dot_dimension_numbers<[1], [1], [0], [0], [0, 0, 1, 0], [], []>} : vector<8x16xf32>, vector<8x16xf32>, vector<8x8xf32> -> vector<8x8xf32>
    %cst_23 = arith.constant dense<0xFF800000> : vector<8xf32>
    %43 = vector.multi_reduction <maximumf>, %42, %cst_23 [1] : vector<8x8xf32> to vector<8xf32>
    %44 = vector.shape_cast %43 : vector<8xf32> to vector<8x1xf32>
    %45 = vector.broadcast %44 : vector<8x1xf32> to vector<8x8xf32>
    %46 = arith.subf %42, %45 : vector<8x8xf32>
    %47 = math.exp %46 : vector<8x8xf32>
    %cst_24 = arith.constant dense<0.000000e+00> : vector<8xf32>
    %48 = vector.multi_reduction <add>, %47, %cst_24 [1] : vector<8x8xf32> to vector<8xf32>
    %49 = vector.shape_cast %48 : vector<8xf32> to vector<8x1xf32>
    %50 = vector.broadcast %49 : vector<8x1xf32> to vector<8x8xf32>
    %51 = arith.divf %47, %50 : vector<8x8xf32>
    %cst_25 = arith.constant dense<0.000000e+00> : vector<8x16xf32>
    %52 = tpu.matmul %51, %41, %cst_25 {dimension_numbers = #tpu.dot_dimension_numbers<[1], [0], [0], [1], [0, 0, 1, 1], [], []>} : vector<8x8xf32>, vector<8x16xf32>, vector<8x16xf32> -> vector<8x16xf32>
    %53 = vector.extract_strided_slice %22 {offsets = [0, 32], sizes = [8, 16], strides = [1, 1]} : vector<8x64xf32> to vector<8x16xf32>
    %54 = vector.extract_strided_slice %23 {offsets = [0, 32], sizes = [8, 16], strides = [1, 1]} : vector<8x64xf32> to vector<8x16xf32>
    %55 = vector.extract_strided_slice %24 {offsets = [0, 32], sizes = [8, 16], strides = [1, 1]} : vector<8x64xf32> to vector<8x16xf32>
    %cst_26 = arith.constant dense<0.000000e+00> : vector<8x8xf32>
    %56 = tpu.matmul %53, %54, %cst_26 {dimension_numbers = #tpu.dot_dimension_numbers<[1], [1], [0], [0], [0, 0, 1, 0], [], []>} : vector<8x16xf32>, vector<8x16xf32>, vector<8x8xf32> -> vector<8x8xf32>
    %cst_27 = arith.constant dense<0xFF800000> : vector<8xf32>
    %57 = vector.multi_reduction <maximumf>, %56, %cst_27 [1] : vector<8x8xf32> to vector<8xf32>
    %58 = vector.shape_cast %57 : vector<8xf32> to vector<8x1xf32>
    %59 = vector.broadcast %58 : vector<8x1xf32> to vector<8x8xf32>
    %60 = arith.subf %56, %59 : vector<8x8xf32>
    %61 = math.exp %60 : vector<8x8xf32>
    %cst_28 = arith.constant dense<0.000000e+00> : vector<8xf32>
    %62 = vector.multi_reduction <add>, %61, %cst_28 [1] : vector<8x8xf32> to vector<8xf32>
    %63 = vector.shape_cast %62 : vector<8xf32> to vector<8x1xf32>
    %64 = vector.broadcast %63 : vector<8x1xf32> to vector<8x8xf32>
    %65 = arith.divf %61, %64 : vector<8x8xf32>
    %cst_29 = arith.constant dense<0.000000e+00> : vector<8x16xf32>
    %66 = tpu.matmul %65, %55, %cst_29 {dimension_numbers = #tpu.dot_dimension_numbers<[1], [0], [0], [1], [0, 0, 1, 1], [], []>} : vector<8x8xf32>, vector<8x16xf32>, vector<8x16xf32> -> vector<8x16xf32>
    %67 = vector.extract_strided_slice %22 {offsets = [0, 48], sizes = [8, 16], strides = [1, 1]} : vector<8x64xf32> to vector<8x16xf32>
    %68 = vector.extract_strided_slice %23 {offsets = [0, 48], sizes = [8, 16], strides = [1, 1]} : vector<8x64xf32> to vector<8x16xf32>
    %69 = vector.extract_strided_slice %24 {offsets = [0, 48], sizes = [8, 16], strides = [1, 1]} : vector<8x64xf32> to vector<8x16xf32>
    %cst_30 = arith.constant dense<0.000000e+00> : vector<8x8xf32>
    %70 = tpu.matmul %67, %68, %cst_30 {dimension_numbers = #tpu.dot_dimension_numbers<[1], [1], [0], [0], [0, 0, 1, 0], [], []>} : vector<8x16xf32>, vector<8x16xf32>, vector<8x8xf32> -> vector<8x8xf32>
    %cst_31 = arith.constant dense<0xFF800000> : vector<8xf32>
    %71 = vector.multi_reduction <maximumf>, %70, %cst_31 [1] : vector<8x8xf32> to vector<8xf32>
    %72 = vector.shape_cast %71 : vector<8xf32> to vector<8x1xf32>
    %73 = vector.broadcast %72 : vector<8x1xf32> to vector<8x8xf32>
    %74 = arith.subf %70, %73 : vector<8x8xf32>
    %75 = math.exp %74 : vector<8x8xf32>
    %cst_32 = arith.constant dense<0.000000e+00> : vector<8xf32>
    %76 = vector.multi_reduction <add>, %75, %cst_32 [1] : vector<8x8xf32> to vector<8xf32>
    %77 = vector.shape_cast %76 : vector<8xf32> to vector<8x1xf32>
    %78 = vector.broadcast %77 : vector<8x1xf32> to vector<8x8xf32>
    %79 = arith.divf %75, %78 : vector<8x8xf32>
    %cst_33 = arith.constant dense<0.000000e+00> : vector<8x16xf32>
    %80 = tpu.matmul %79, %69, %cst_33 {dimension_numbers = #tpu.dot_dimension_numbers<[1], [0], [0], [1], [0, 0, 1, 1], [], []>} : vector<8x8xf32>, vector<8x16xf32>, vector<8x16xf32> -> vector<8x16xf32>
    %81 = tpu.concatenate %38, %52, %66, %80 in 1 : vector<8x16xf32>, vector<8x16xf32>, vector<8x16xf32>, vector<8x16xf32> -> vector<8x64xf32>
    %cst_34 = arith.constant dense<0.000000e+00> : vector<8x32xf32>
    %82 = tpu.matmul %81, %6, %cst_34 {dimension_numbers = #tpu.dot_dimension_numbers<[1], [0], [0], [1], [0, 0, 1, 1], [], []>} : vector<8x64xf32>, vector<64x32xf32>, vector<8x32xf32> -> vector<8x32xf32>
    %83 = vector.broadcast %10 : vector<1x32xf32> to vector<8x32xf32>
    %84 = arith.addf %82, %83 : vector<8x32xf32>
    %85 = vector.extract_strided_slice %0 {offsets = [0, 0], sizes = [8, 32], strides = [1, 1]} : vector<16x32xf32> to vector<8x32xf32>
    %86 = arith.addf %84, %85 : vector<8x32xf32>
    %cst_35 = arith.constant dense<0.000000e+00> : vector<8xf32>
    %87 = vector.multi_reduction <add>, %86, %cst_35 [1] : vector<8x32xf32> to vector<8xf32>
    %88 = vector.shape_cast %87 : vector<8xf32> to vector<8x1xf32>
    %cst_36 = arith.constant 3.200000e+01 : f32
    %89 = vector.broadcast %cst_36 : f32 to vector<8x1xf32>
    %90 = arith.divf %88, %89 : vector<8x1xf32>
    %91 = vector.broadcast %90 : vector<8x1xf32> to vector<8x32xf32>
    %92 = arith.subf %86, %91 : vector<8x32xf32>
    %93 = arith.mulf %92, %92 : vector<8x32xf32>
    %cst_37 = arith.constant dense<0.000000e+00> : vector<8xf32>
    %94 = vector.multi_reduction <add>, %93, %cst_37 [1] : vector<8x32xf32> to vector<8xf32>
    %95 = vector.shape_cast %94 : vector<8xf32> to vector<8x1xf32>
    %cst_38 = arith.constant 3.200000e+01 : f32
    %96 = vector.broadcast %cst_38 : f32 to vector<8x1xf32>
    %97 = arith.divf %95, %96 : vector<8x1xf32>
    %98 = vector.broadcast %90 : vector<8x1xf32> to vector<8x32xf32>
    %99 = arith.subf %86, %98 : vector<8x32xf32>
    %cst_39 = arith.constant 9.99999974E-6 : f32
    %100 = vector.broadcast %cst_39 : f32 to vector<8x1xf32>
    %101 = arith.addf %97, %100 : vector<8x1xf32>
    %102 = math.rsqrt %101 : vector<8x1xf32>
    %103 = vector.broadcast %102 : vector<8x1xf32> to vector<8x32xf32>
    %104 = arith.mulf %99, %103 : vector<8x32xf32>
    %105 = vector.broadcast %11 : vector<1x32xf32> to vector<8x32xf32>
    %106 = arith.mulf %104, %105 : vector<8x32xf32>
    %107 = vector.broadcast %12 : vector<1x32xf32> to vector<8x32xf32>
    %108 = arith.addf %106, %107 : vector<8x32xf32>
    %c0_40 = arith.constant 0 : index
    %c0_41 = arith.constant 0 : index
    %109 = vector.load %arg4[%c0_40, %c0_41] : memref<16x32xf32, #tpu.memory_space<vmem>>, vector<8x32xf32>
    tpu.vector_store %arg4[%c0_40, %c0_41], %108 {strides = array<i32>} : memref<16x32xf32, #tpu.memory_space<vmem>>, vector<8x32xf32>,
    %110 = vector.extract_strided_slice %15 {offsets = [8, 0], sizes = [8, 64], strides = [1, 1]} : vector<16x64xf32> to vector<8x64xf32>
    %111 = vector.extract_strided_slice %18 {offsets = [8, 0], sizes = [8, 64], strides = [1, 1]} : vector<16x64xf32> to vector<8x64xf32>
    %112 = vector.extract_strided_slice %21 {offsets = [8, 0], sizes = [8, 64], strides = [1, 1]} : vector<16x64xf32> to vector<8x64xf32>
    %113 = vector.extract_strided_slice %110 {offsets = [0, 0], sizes = [8, 16], strides = [1, 1]} : vector<8x64xf32> to vector<8x16xf32>
    %114 = vector.extract_strided_slice %111 {offsets = [0, 0], sizes = [8, 16], strides = [1, 1]} : vector<8x64xf32> to vector<8x16xf32>
    %115 = vector.extract_strided_slice %112 {offsets = [0, 0], sizes = [8, 16], strides = [1, 1]} : vector<8x64xf32> to vector<8x16xf32>
    %cst_42 = arith.constant dense<0.000000e+00> : vector<8x8xf32>
    %116 = tpu.matmul %113, %114, %cst_42 {dimension_numbers = #tpu.dot_dimension_numbers<[1], [1], [0], [0], [0, 0, 1, 0], [], []>} : vector<8x16xf32>, vector<8x16xf32>, vector<8x8xf32> -> vector<8x8xf32>
    %cst_43 = arith.constant dense<0xFF800000> : vector<8xf32>
    %117 = vector.multi_reduction <maximumf>, %116, %cst_43 [1] : vector<8x8xf32> to vector<8xf32>
    %118 = vector.shape_cast %117 : vector<8xf32> to vector<8x1xf32>
    %119 = vector.broadcast %118 : vector<8x1xf32> to vector<8x8xf32>
    %120 = arith.subf %116, %119 : vector<8x8xf32>
    %121 = math.exp %120 : vector<8x8xf32>
    %cst_44 = arith.constant dense<0.000000e+00> : vector<8xf32>
    %122 = vector.multi_reduction <add>, %121, %cst_44 [1] : vector<8x8xf32> to vector<8xf32>
    %123 = vector.shape_cast %122 : vector<8xf32> to vector<8x1xf32>
    %124 = vector.broadcast %123 : vector<8x1xf32> to vector<8x8xf32>
    %125 = arith.divf %121, %124 : vector<8x8xf32>
    %cst_45 = arith.constant dense<0.000000e+00> : vector<8x16xf32>
    %126 = tpu.matmul %125, %115, %cst_45 {dimension_numbers = #tpu.dot_dimension_numbers<[1], [0], [0], [1], [0, 0, 1, 1], [], []>} : vector<8x8xf32>, vector<8x16xf32>, vector<8x16xf32> -> vector<8x16xf32>
    %127 = vector.extract_strided_slice %110 {offsets = [0, 16], sizes = [8, 16], strides = [1, 1]} : vector<8x64xf32> to vector<8x16xf32>
    %128 = vector.extract_strided_slice %111 {offsets = [0, 16], sizes = [8, 16], strides = [1, 1]} : vector<8x64xf32> to vector<8x16xf32>
    %129 = vector.extract_strided_slice %112 {offsets = [0, 16], sizes = [8, 16], strides = [1, 1]} : vector<8x64xf32> to vector<8x16xf32>
    %cst_46 = arith.constant dense<0.000000e+00> : vector<8x8xf32>
    %130 = tpu.matmul %127, %128, %cst_46 {dimension_numbers = #tpu.dot_dimension_numbers<[1], [1], [0], [0], [0, 0, 1, 0], [], []>} : vector<8x16xf32>, vector<8x16xf32>, vector<8x8xf32> -> vector<8x8xf32>
    %cst_47 = arith.constant dense<0xFF800000> : vector<8xf32>
    %131 = vector.multi_reduction <maximumf>, %130, %cst_47 [1] : vector<8x8xf32> to vector<8xf32>
    %132 = vector.shape_cast %131 : vector<8xf32> to vector<8x1xf32>
    %133 = vector.broadcast %132 : vector<8x1xf32> to vector<8x8xf32>
    %134 = arith.subf %130, %133 : vector<8x8xf32>
    %135 = math.exp %134 : vector<8x8xf32>
    %cst_48 = arith.constant dense<0.000000e+00> : vector<8xf32>
    %136 = vector.multi_reduction <add>, %135, %cst_48 [1] : vector<8x8xf32> to vector<8xf32>
    %137 = vector.shape_cast %136 : vector<8xf32> to vector<8x1xf32>
    %138 = vector.broadcast %137 : vector<8x1xf32> to vector<8x8xf32>
    %139 = arith.divf %135, %138 : vector<8x8xf32>
    %cst_49 = arith.constant dense<0.000000e+00> : vector<8x16xf32>
    %140 = tpu.matmul %139, %129, %cst_49 {dimension_numbers = #tpu.dot_dimension_numbers<[1], [0], [0], [1], [0, 0, 1, 1], [], []>} : vector<8x8xf32>, vector<8x16xf32>, vector<8x16xf32> -> vector<8x16xf32>
    %141 = vector.extract_strided_slice %110 {offsets = [0, 32], sizes = [8, 16], strides = [1, 1]} : vector<8x64xf32> to vector<8x16xf32>
    %142 = vector.extract_strided_slice %111 {offsets = [0, 32], sizes = [8, 16], strides = [1, 1]} : vector<8x64xf32> to vector<8x16xf32>
    %143 = vector.extract_strided_slice %112 {offsets = [0, 32], sizes = [8, 16], strides = [1, 1]} : vector<8x64xf32> to vector<8x16xf32>
    %cst_50 = arith.constant dense<0.000000e+00> : vector<8x8xf32>
    %144 = tpu.matmul %141, %142, %cst_50 {dimension_numbers = #tpu.dot_dimension_numbers<[1], [1], [0], [0], [0, 0, 1, 0], [], []>} : vector<8x16xf32>, vector<8x16xf32>, vector<8x8xf32> -> vector<8x8xf32>
    %cst_51 = arith.constant dense<0xFF800000> : vector<8xf32>
    %145 = vector.multi_reduction <maximumf>, %144, %cst_51 [1] : vector<8x8xf32> to vector<8xf32>
    %146 = vector.shape_cast %145 : vector<8xf32> to vector<8x1xf32>
    %147 = vector.broadcast %146 : vector<8x1xf32> to vector<8x8xf32>
    %148 = arith.subf %144, %147 : vector<8x8xf32>
    %149 = math.exp %148 : vector<8x8xf32>
    %cst_52 = arith.constant dense<0.000000e+00> : vector<8xf32>
    %150 = vector.multi_reduction <add>, %149, %cst_52 [1] : vector<8x8xf32> to vector<8xf32>
    %151 = vector.shape_cast %150 : vector<8xf32> to vector<8x1xf32>
    %152 = vector.broadcast %151 : vector<8x1xf32> to vector<8x8xf32>
    %153 = arith.divf %149, %152 : vector<8x8xf32>
    %cst_53 = arith.constant dense<0.000000e+00> : vector<8x16xf32>
    %154 = tpu.matmul %153, %143, %cst_53 {dimension_numbers = #tpu.dot_dimension_numbers<[1], [0], [0], [1], [0, 0, 1, 1], [], []>} : vector<8x8xf32>, vector<8x16xf32>, vector<8x16xf32> -> vector<8x16xf32>
    %155 = vector.extract_strided_slice %110 {offsets = [0, 48], sizes = [8, 16], strides = [1, 1]} : vector<8x64xf32> to vector<8x16xf32>
    %156 = vector.extract_strided_slice %111 {offsets = [0, 48], sizes = [8, 16], strides = [1, 1]} : vector<8x64xf32> to vector<8x16xf32>
    %157 = vector.extract_strided_slice %112 {offsets = [0, 48], sizes = [8, 16], strides = [1, 1]} : vector<8x64xf32> to vector<8x16xf32>
    %cst_54 = arith.constant dense<0.000000e+00> : vector<8x8xf32>
    %158 = tpu.matmul %155, %156, %cst_54 {dimension_numbers = #tpu.dot_dimension_numbers<[1], [1], [0], [0], [0, 0, 1, 0], [], []>} : vector<8x16xf32>, vector<8x16xf32>, vector<8x8xf32> -> vector<8x8xf32>
    %cst_55 = arith.constant dense<0xFF800000> : vector<8xf32>
    %159 = vector.multi_reduction <maximumf>, %158, %cst_55 [1] : vector<8x8xf32> to vector<8xf32>
    %160 = vector.shape_cast %159 : vector<8xf32> to vector<8x1xf32>
    %161 = vector.broadcast %160 : vector<8x1xf32> to vector<8x8xf32>
    %162 = arith.subf %158, %161 : vector<8x8xf32>
    %163 = math.exp %162 : vector<8x8xf32>
    %cst_56 = arith.constant dense<0.000000e+00> : vector<8xf32>
    %164 = vector.multi_reduction <add>, %163, %cst_56 [1] : vector<8x8xf32> to vector<8xf32>
    %165 = vector.shape_cast %164 : vector<8xf32> to vector<8x1xf32>
    %166 = vector.broadcast %165 : vector<8x1xf32> to vector<8x8xf32>
    %167 = arith.divf %163, %166 : vector<8x8xf32>
    %cst_57 = arith.constant dense<0.000000e+00> : vector<8x16xf32>
    %168 = tpu.matmul %167, %157, %cst_57 {dimension_numbers = #tpu.dot_dimension_numbers<[1], [0], [0], [1], [0, 0, 1, 1], [], []>} : vector<8x8xf32>, vector<8x16xf32>, vector<8x16xf32> -> vector<8x16xf32>
    %169 = tpu.concatenate %126, %140, %154, %168 in 1 : vector<8x16xf32>, vector<8x16xf32>, vector<8x16xf32>, vector<8x16xf32> -> vector<8x64xf32>
    %cst_58 = arith.constant dense<0.000000e+00> : vector<8x32xf32>
    %170 = tpu.matmul %169, %6, %cst_58 {dimension_numbers = #tpu.dot_dimension_numbers<[1], [0], [0], [1], [0, 0, 1, 1], [], []>} : vector<8x64xf32>, vector<64x32xf32>, vector<8x32xf32> -> vector<8x32xf32>
    %171 = vector.broadcast %10 : vector<1x32xf32> to vector<8x32xf32>
    %172 = arith.addf %170, %171 : vector<8x32xf32>
    %173 = vector.extract_strided_slice %0 {offsets = [8, 0], sizes = [8, 32], strides = [1, 1]} : vector<16x32xf32> to vector<8x32xf32>
    %174 = arith.addf %172, %173 : vector<8x32xf32>
    %cst_59 = arith.constant dense<0.000000e+00> : vector<8xf32>
    %175 = vector.multi_reduction <add>, %174, %cst_59 [1] : vector<8x32xf32> to vector<8xf32>
    %176 = vector.shape_cast %175 : vector<8xf32> to vector<8x1xf32>
    %cst_60 = arith.constant 3.200000e+01 : f32
    %177 = vector.broadcast %cst_60 : f32 to vector<8x1xf32>
    %178 = arith.divf %176, %177 : vector<8x1xf32>
    %179 = vector.broadcast %178 : vector<8x1xf32> to vector<8x32xf32>
    %180 = arith.subf %174, %179 : vector<8x32xf32>
    %181 = arith.mulf %180, %180 : vector<8x32xf32>
    %cst_61 = arith.constant dense<0.000000e+00> : vector<8xf32>
    %182 = vector.multi_reduction <add>, %181, %cst_61 [1] : vector<8x32xf32> to vector<8xf32>
    %183 = vector.shape_cast %182 : vector<8xf32> to vector<8x1xf32>
    %cst_62 = arith.constant 3.200000e+01 : f32
    %184 = vector.broadcast %cst_62 : f32 to vector<8x1xf32>
    %185 = arith.divf %183, %184 : vector<8x1xf32>
    %186 = vector.broadcast %178 : vector<8x1xf32> to vector<8x32xf32>
    %187 = arith.subf %174, %186 : vector<8x32xf32>
    %cst_63 = arith.constant 9.99999974E-6 : f32
    %188 = vector.broadcast %cst_63 : f32 to vector<8x1xf32>
    %189 = arith.addf %185, %188 : vector<8x1xf32>
    %190 = math.rsqrt %189 : vector<8x1xf32>
    %191 = vector.broadcast %190 : vector<8x1xf32> to vector<8x32xf32>
    %192 = arith.mulf %187, %191 : vector<8x32xf32>
    %193 = vector.broadcast %11 : vector<1x32xf32> to vector<8x32xf32>
    %194 = arith.mulf %192, %193 : vector<8x32xf32>
    %195 = vector.broadcast %12 : vector<1x32xf32> to vector<8x32xf32>
    %196 = arith.addf %194, %195 : vector<8x32xf32>
    %c8 = arith.constant 8 : index
    %c0_64 = arith.constant 0 : index
    %197 = vector.load %arg4[%c8, %c0_64] : memref<16x32xf32, #tpu.memory_space<vmem>>, vector<8x32xf32>
    tpu.vector_store %arg4[%c8, %c0_64], %196 {strides = array<i32>} : memref<16x32xf32, #tpu.memory_space<vmem>>, vector<8x32xf32>,
    return
  }
}

</mosaic_0001>

<bundles_post_ra>
// kernel: attention_layer.1
= control target key start
LH: loop header
LB: loop body
LE: loop exit
PB: predicated region body
PF: predicated region fallthrough
CT: control target
= control target key end

     0   :  { %vm54_vm0 = vcmask 261120   ;;  %s2532_s0 = inlined_call_operand.vmem [shape: f32[16,32], index: 0, kind: input, shape index: {}]   ;;  %s2533_s1 = inlined_call_operand.vmem [shape: f32[16,32], index: 1, kind: input, shape index: {}]   ;;  %s2534_s2 = inlined_call_operand.vmem [shape: f32[16,32], index: 2, kind: input, shape index: {}]   ;;  %s2535_s3 = inlined_call_operand.vmem [shape: f32[166,64], index: 3, kind: input, shape index: {}]   ;;  %s2536_s4 = inlined_call_operand.hbm [shape: f32[16,32], index: 4, kind: output, shape index: {}]  }
   0x1   :  { %v27_v0 = vld [vmem:[%s2535_s3 + $0x18] sm:$0xff]  ;;  %v26_v1 = vld [vmem:[%s2535_s3 + $0x10] sm:$0xff]  ;;  %v2232_v2 = vld [vmem:[%s2532_s0] sm:$0xff] }
   0x2   :  { %1967 = vmatprep.subr.mxu1 %v27_v0  ;;  %v25_v3 = vld [vmem:[%s2535_s3 + $0x8] sm:$0xff]  ;;  %1975 = vmatprep.mubr.msk.f32.mxu1 %vm54_vm0, %v2232_v2  ;;  %v24_v4 = vld [vmem:[%s2535_s3] sm:$0xff] }
   0x3   :  { %1968 = vmatpush3.msra.mxu1 %v27_v0 }
   0x4   :  { %1969 = vmatprep.subr.mxu1 %v26_v1 }
   0x5   :  { %1970 = vmatpush3.msra.mxu1 %v26_v1 }
   0x6   :  { %9 = vsyncpa [#allocation3], 0  ;;  %1971 = vmatprep.subr.mxu1 %v25_v3  ;;  %v2245_v5 = vld [vmem:[%s2532_s0 + $0x8] sm:$0xff]  ;;  %v31_v6 = vld [vmem:[%s2535_s3 + $0x38] sm:$0xff]  ;;  %v2187_v12 = vmov 0.0   ;;  %vm2188_vm1 = vmmov 0  }
   0x7   :  { %1972 = vmatpush3.msra.mxu1 %v25_v3  ;;  %v20_v7 = vld [vmem:[%s2533_s1] sm:$0xff]  ;;  %v30_v8 = vld [vmem:[%s2535_s3 + $0x30] sm:$0xff]  ;;  %v29_v9 = vld [vmem:[%s2535_s3 + $0x28] sm:$0xff]  ;;  %vm306_vm2 = vcmask 130048   ;;  %s2190_s27 = smov 112   ;;  %s2191_s28 = smov 80  }
   0x8   :  { %1973 = vmatprep.subr.mxu1 %v24_v4  ;;  %v28_v10 = vld [vmem:[%s2535_s3 + $0x20] sm:$0xff]  ;;  %v21_v11 = vld [vmem:[%s2533_s1 + $0x8] sm:$0xff]  ;;  %v35_v13 = vld [vmem:[%s2535_s3 + $0x58] sm:$0xff]  ;;  %vm383_vm3 = vcmask 64512   ;;  %s2192_s5 = smov 16   ;;  %s2193_s6 = smov 32  }
   0x9   :  { %1974 = vmatpush3.msra.mxu1 %v24_v4  ;;  %v34_v14 = vld [vmem:[%s2535_s3 + $0x50] sm:$0xff]  ;;  %1989 = vmatprep.subr.mxu0 %v35_v13  ;;  %v22_v15 = vld [vmem:[%s2534_s2] sm:$0xff]  ;;  %v33_v16 = vld [vmem:[%s2535_s3 + $0x48] sm:$0xff]  ;;  %s2194_s21 = smov 48   ;;  %vm978_vm4 = vcmask 392192   ;;  %vm984_vm5 = vcmask 523264  }
   0xa   :  { %1976 = vmatmul.mubr.msk.f32.vlgmr.msra.gmra.mxu1 %vm54_vm0, %v2245_v5  ;;  %1978 = vmatprep.subr.mxu1 %v31_v6  ;;  %v32_v17 = vld [vmem:[%s2535_s3 + $0x40] sm:$0xff]  ;;  %v23_v18 = vld [vmem:[%s2534_s2 + $0x8] sm:$0xff]  ;;  %s2189_s2 = smov 96  }
   0xb   :  { %1979 = vmatpush3.msra.mxu1 %v31_v6  ;;  %1986 = vmatprep.mubr.msk.f32.mxu1 %vm54_vm0, %v20_v7  ;;  %v1861_v19 = vld [vmem:[%s2535_s3 + $0xa0] ss:$0 sm:$0xff]  ;;  %v1864_v23 = vld [vmem:[%s2535_s3 + $0xa1] ss:$0 sm:$0xff]  ;;  %v1867_v29 = vld [vmem:[%s2535_s3 + $0xa2] ss:$0 sm:$0xff] }
   0xc   :  { %1980 = vmatprep.subr.mxu1 %v30_v8  ;;  %1990 = vmatpush3.msra.mxu0 %v35_v13 }
   0xd   :  { %1981 = vmatpush3.msra.mxu1 %v30_v8  ;;  %1997 = vmatprep.mubr.msk.f32.mxu0 %vm54_vm0, %v22_v15 }
   0xe   :  { %1982 = vmatprep.subr.mxu1 %v29_v9  ;;  %1991 = vmatprep.subr.mxu0 %v34_v14 }
   0xf   :  { %1983 = vmatpush3.msra.mxu1 %v29_v9  ;;  %1992 = vmatpush3.msra.mxu0 %v34_v14 }
  0x10   :  { %1984 = vmatprep.subr.mxu1 %v28_v10  ;;  %1993 = vmatprep.subr.mxu0 %v33_v16 }
  0x11   :  { %1985 = vmatpush3.msra.mxu1 %v28_v10  ;;  %1994 = vmatpush3.msra.mxu0 %v33_v16 }
  0x12   :  { %1987 = vmatmul.mubr.msk.f32.vlgmr.msra.gmra.mxu1 %vm54_vm0, %v21_v11  ;;  %2000 = vmatprep.subr.mxu1 %v2187_v12 }
  0x13   :  { %2002 = vmatprep.mubr.msk.f32.mxu1 %vm2188_vm1, %v2187_v12  ;;  %1995 = vmatprep.subr.mxu0 %v32_v17 }
  0x14   :  { %1996 = vmatpush3.msra.mxu0 %v32_v17 }
  0x15   :  { %1998 = vmatmul.mubr.msk.f32.vlgmr.msra.gmra.mxu0 %vm54_vm0, %v23_v18  ;;  %2010 = vmatprep.subr.mxu0 %v2187_v12 }
  0x16   :  { %2012 = vmatprep.mubr.msk.f32.mxu0 %vm2188_vm1, %v2187_v12 }
  0xca   :  { %v1977_v20 = vpop.f32.mrf.mxu1 }
  0xcb   :  { %v2298_v21 = vadd.f32 %v1977_v20, %v1861_v19 }
  0xcc   :  { %v127_v22 = vpop.f32.mrf.mxu1 }
  0xcd   :  { %v128_v28 = vadd.f32 %v1861_v19, %v127_v22 }
  0xd2   :  { %v1988_v24 = vpop.f32.mrf.mxu1 }
  0xd3   :  { %v2303_v25 = vadd.f32 %v1988_v24, %v1864_v23 }
  0xd4   :  { %v212_v26 = vpop.f32.mrf.mxu1 }
  0xd5   :  { %v213_v27 = vadd.f32 %v1864_v23, %v212_v26  ;;  %v1999_v30 = vpop.f32.mrf.mxu0 }
  0xd6   :  { %v2319_v31 = vadd.f32 %v1999_v30, %v1867_v29 }
  0xd7   :  { %636 = vrot.lane.b32.xlu1 %v213_v27, %s2189_s2  ;;  %470 = vrot.lane.b32.xlu0 %v213_v27, %s2190_s27  ;;  %v297_v32 = vpop.f32.mrf.mxu0 }
  0xd8   :  { %2001 = vmatpush3.xpose.msk.msra.mxu1 %vm306_vm2, %v213_v27  ;;  %v2321_v33 = vadd.f32 %v1867_v29, %v297_v32 }
  0xd9   :  { %2005 = vmatprep.subr.mxu1 %v2187_v12 }
  0xdb   :  { %2003 = vmatmul.mubr.msk.f32.vlgmr.msra.gmra.mxu1 %vm306_vm2, %v128_v28  ;;  %634 = vrot.lane.b32.xlu1 %v128_v28, %s2189_s2 }
  0xdc   :  { %468 = vrot.lane.b32.xlu0 %v128_v28, %s2190_s27  ;;  %2007 = vmatprep.mubr.msk.f32.mxu1 %vm2188_vm1, %v2187_v12 }
  0xdd   :  { %2006 = vmatpush3.msra.mxu1 %v2321_v33 }
  0xde   :  { %2015 = vmatprep.subr.mxu1 %v2187_v12 }
  0xdf   :  { %799 = vrot.lane.b32.xlu1 %v128_v28, %s2191_s28 }
  0xe0   :  { %801 = vrot.lane.b32.xlu0 %v213_v27, %s2191_s28 }
 0x149   :  { %v471_v34 = vpop.permute.xlu0 %470  ;;  %v637_v35 = vpop.permute.xlu1 %636 }
 0x14a   :  { %2011 = vmatpush3.xpose.msk.msra.mxu0 %vm306_vm2, %v471_v34 }
 0x14b   :  { %2020 = vmatprep.subr.mxu0 %v2187_v12 }
 0x14d   :  { %v635_v37 = vpop.permute.xlu1 %634 }
 0x14e   :  { %v469_v36 = vpop.permute.xlu0 %468 }
 0x14f   :  { %2013 = vmatmul.mubr.msk.f32.vlgmr.msra.gmra.mxu0 %vm306_vm2, %v469_v36 }
 0x150   :  { %2021 = vmatpush3.xpose.msk.msra.mxu0 %vm306_vm2, %v637_v35  ;;  %2022 = vmatprep.mubr.msk.f32.mxu0 %vm2188_vm1, %v2187_v12 }
 0x151   :  { %2030 = vmatprep.subr.mxu0 %v2187_v12  ;;  %v800_v39 = vpop.permute.xlu1 %799 }
 0x152   :  { %v802_v38 = vpop.permute.xlu0 %801 }
 0x153   :  { %2023 = vmatmul.mubr.msk.f32.vlgmr.msra.gmra.mxu0 %vm306_vm2, %v635_v37 }
 0x154   :  { %2031 = vmatpush3.xpose.msk.msra.mxu0 %vm306_vm2, %v802_v38  ;;  %2032 = vmatprep.mubr.msk.f32.mxu0 %vm2188_vm1, %v2187_v12 }
 0x155   :  { %2040 = vmatprep.subr.mxu0 %v2187_v12 }
 0x157   :  { %2033 = vmatmul.mubr.msk.f32.vlgmr.msra.gmra.mxu0 %vm306_vm2, %v800_v39 }
 0x158   :  { %2056 = vmatprep.mubr.msk.f32.mxu0 %vm2188_vm1, %v2187_v12 }
 0x19b   :  { %v379_v40 = vpop.f32.mrf.mxu1 }
 0x19c   :  { %v384_v41 = vsel %vm383_vm3, %v379_v40, -inf }
 0x19d   :  { %385 = vmax.xlane.f32.xlu0 %v384_v41  ;;  %v2004_v42 = vpop.f32.mrf.mxu1  ;;  %v2397_v41 = vld [vmem:[%s2535_s3 + $0x90] sm:$0xff] }
 0x19e   :  { %v2404_v42 = vld [vmem:[%s2535_s3 + $0x88] sm:$0xff] }
 0x20f   :  { %v542_v43 = vpop.f32.mrf.mxu0 }
 0x210   :  { %v546_v44 = vsel %vm383_vm3, %v542_v43, -inf }
 0x211   :  { %547 = vmax.xlane.f32.xlu1 %v546_v44  ;;  %v2014_v45 = vpop.f32.mrf.mxu0 }
 0x213   :  { %v708_v46 = vpop.f32.mrf.mxu0 }
 0x214   :  { %v712_v47 = vsel %vm383_vm3, %v708_v46, -inf }
 0x215   :  { %v2024_v48 = vpop.f32.mrf.mxu0  ;;  %713 = vmax.xlane.f32.xlu0 %v712_v47 }
 0x217   :  { %v873_v49 = vpop.f32.mrf.mxu0 }
 0x218   :  { %v877_v50 = vsel %vm383_vm3, %v873_v49, -inf }
 0x219   :  { %v2034_v51 = vpop.f32.mrf.mxu0  ;;  %878 = vmax.xlane.f32.xlu0 %v877_v50  ;;  %v37_v50 = vld [vmem:[%s2535_s3 + $0x68] sm:$0xff] }
 0x21a   :  { %v36_v51 = vld [vmem:[%s2535_s3 + $0x60] sm:$0xff] }
 0x222   :  { %558 = vrot.lane.b32.xlu1 %v2321_v33, %s2190_s27 }
 0x226   :  { %v386_v52 = vpop.xlane.xlu0 %385 }
 0x227   :  { %v387_v53 = vsub.f32 %v379_v40, %v386_v52  ;;  %v2392_v40 = vld [vmem:[%s2535_s3 + $0x98] sm:$0xff] }
 0x228   :  { %2041 = vmatpush3.msra.mxu0 %v2392_v40 }
 0x229   :  { %v388_v54 = vmul.f32 1.442695, %v387_v53  ;;  %2042 = vmatprep.subr.mxu0 %v2187_v12 }
 0x22a   :  { %2043 = vmatpush3.msra.mxu0 %v2397_v41 }
 0x22b   :  { %2129 = vpow2.f32 %v388_v54  ;;  %2044 = vmatprep.subr.mxu0 %v2187_v12 }
 0x22c   :  { %2045 = vmatpush3.msra.mxu0 %v2404_v42 }
 0x22d   :  { %2046 = vmatprep.subr.mxu0 %v2187_v12 }
 0x238   :  { %v2130_v55 = vpop.eup %2129 }
 0x239   :  { %v390_v56 = vsel %vm383_vm3, %v2130_v55, 0.0 }
 0x246   :  { %391 = vadd.xlane.f32.xlu1 %v390_v56 }
 0x29a   :  { %v548_v57 = vpop.xlane.xlu1 %547 }
 0x29b   :  { %v549_v58 = vsub.f32 %v542_v43, %v548_v57  ;;  %v2418_v43 = vld [vmem:[%s2535_s3 + $0x78] sm:$0xff] }
 0x29d   :  { %v550_v59 = vmul.f32 1.442695, %v549_v58 }
 0x29e   :  { %v714_v60 = vpop.xlane.xlu0 %713  ;;  %v559_v10 = vpop.permute.xlu1 %558 }
 0x29f   :  { %2131 = vpow2.f32 %v550_v59  ;;  %v715_v61 = vsub.f32 %v708_v46, %v714_v60 }
 0x2a1   :  { %v716_v62 = vmul.f32 1.442695, %v715_v61 }
 0x2a2   :  { %v879_v63 = vpop.xlane.xlu0 %878 }
 0x2a3   :  { %2133 = vpow2.f32 %v716_v62  ;;  %v880_v0 = vsub.f32 %v873_v49, %v879_v63  ;;  %v38_v49 = vld [vmem:[%s2535_s3 + $0x70] sm:$0xff] }
 0x2a5   :  { %v881_v1 = vmul.f32 1.442695, %v880_v0 }
 0x2a7   :  { %2135 = vpow2.f32 %v881_v1 }
 0x2ac   :  { %v2132_v3 = vpop.eup %2131 }
 0x2ad   :  { %v552_v4 = vsel %vm383_vm3, %v2132_v3, 0.0 }
 0x2ae   :  { %553 = vadd.xlane.f32.xlu0 %v552_v4 }
 0x2b0   :  { %v2134_v6 = vpop.eup %2133 }
 0x2b1   :  { %v718_v7 = vsel %vm383_vm3, %v2134_v6, 0.0 }
 0x2b2   :  { %719 = vadd.xlane.f32.xlu1 %v718_v7 }
 0x2b4   :  { %v2136_v8 = vpop.eup %2135 }
 0x2b5   :  { %v883_v9 = vsel %vm383_vm3, %v2136_v8, 0.0 }
 0x2b6   :  { %884 = vadd.xlane.f32.xlu0 %v883_v9 }
 0x2c3   :  { %888 = vrot.lane.b32.xlu1 %v2321_v33, %s2191_s28 }
 0x2cc   :  { %723 = vrot.lane.b32.xlu0 %v2321_v33, %s2189_s2 }
 0x2cf   :  { %v392_v11 = vpop.xlane.xlu1 %391 }
 0x2d0   :  { %2137 = vrcp.f32 %v392_v11 }
 0x2dd   :  { %v2138_v13 = vpop.eup %2137 }
 0x2de   :  { %v394_v14 = vmul.f32 %v2138_v13, %v2130_v55 }
 0x2e0   :  { %2008 = vmatmul.mubr.msk.f32.vlgmr.msra.gmra.mxu1 %vm383_vm3, %v394_v14 }
 0x2e1   :  { %2016 = vmatpush3.msra.mxu1 %v559_v10  ;;  %2017 = vmatprep.mubr.msk.f32.mxu1 %vm2188_vm1, %v2187_v12 }
 0x2e2   :  { %2025 = vmatprep.subr.mxu1 %v2187_v12 }
 0x337   :  { %v554_v15 = vpop.xlane.xlu0 %553 }
 0x338   :  { %2139 = vrcp.f32 %v554_v15 }
 0x33b   :  { %v720_v16 = vpop.xlane.xlu1 %719 }
 0x33c   :  { %2141 = vrcp.f32 %v720_v16 }
 0x33f   :  { %v885_v17 = vpop.xlane.xlu0 %884  ;;  %v889_v24 = vpop.permute.xlu1 %888 }
 0x340   :  { %2143 = vrcp.f32 %v885_v17 }
 0x343   :  { %v724_v20 = vpop.permute.xlu0 %723 }
 0x345   :  { %v2140_v18 = vpop.eup %2139 }
 0x346   :  { %v556_v19 = vmul.f32 %v2140_v18, %v2132_v3 }
 0x348   :  { %2018 = vmatmul.mubr.msk.f32.vlgmr.msra.gmra.mxu1 %vm383_vm3, %v556_v19 }
 0x349   :  { %v2142_v22 = vpop.eup %2141  ;;  %2026 = vmatpush3.msra.mxu1 %v724_v20  ;;  %2027 = vmatprep.mubr.msk.f32.mxu1 %vm2188_vm1, %v2187_v12 }
 0x34a   :  { %2035 = vmatprep.subr.mxu1 %v2187_v12  ;;  %v722_v23 = vmul.f32 %v2142_v22, %v2134_v6 }
 0x34c   :  { %2028 = vmatmul.mubr.msk.f32.vlgmr.msra.gmra.mxu1 %vm383_vm3, %v722_v23 }
 0x34d   :  { %v2144_v26 = vpop.eup %2143  ;;  %2036 = vmatpush3.msra.mxu1 %v889_v24  ;;  %2037 = vmatprep.mubr.msk.f32.mxu1 %vm2188_vm1, %v2187_v12 }
 0x34e   :  { %2059 = vmatprep.subr.mxu1 %v2187_v12  ;;  %v887_v27 = vmul.f32 %v2144_v26, %v2136_v8 }
 0x350   :  { %2038 = vmatmul.mubr.msk.f32.vlgmr.msra.gmra.mxu1 %vm383_vm3, %v887_v27 }
 0x351   :  { %2060 = vmatpush3.xpose.msk.msra.mxu1 %vm306_vm2, %v2303_v25  ;;  %2061 = vmatprep.mubr.msk.f32.mxu1 %vm2188_vm1, %v2187_v12 }
 0x352   :  { %2064 = vmatprep.subr.mxu1 %v2187_v12 }
 0x354   :  { %2062 = vmatmul.mubr.msk.f32.vlgmr.msra.gmra.mxu1 %vm306_vm2, %v2298_v21 }
 0x355   :  { %2065 = vmatpush3.msra.mxu1 %v2319_v31  ;;  %2066 = vmatprep.mubr.msk.f32.mxu1 %vm2188_vm1, %v2187_v12 }
 0x356   :  { %2069 = vmatprep.subr.mxu1 %v2187_v12 }
 0x3a0   :  { %v464_v28 = vpop.f32.mrf.mxu1 }
 0x3a2   :  { %v2009_v29 = vpop.f32.mrf.mxu1 }
 0x408   :  { %v630_v30 = vpop.f32.mrf.mxu1 }
 0x409   :  { %965 = vrot.lane.b32.xlu0 %v630_v30, %s2192_s5 }
 0x40a   :  { %v2019_v32 = vpop.f32.mrf.mxu1 }
 0x40c   :  { %v795_v33 = vpop.f32.mrf.mxu1 }
 0x40e   :  { %v2029_v34 = vpop.f32.mrf.mxu1 }
 0x410   :  { %v960_v35 = vpop.f32.mrf.mxu1 }
 0x412   :  { %v2039_v36 = vpop.f32.mrf.mxu1 }
 0x414   :  { %v1156_v37 = vpop.f32.mrf.mxu1 }
 0x415   :  { %v1160_v38 = vsel %vm383_vm3, %v1156_v37, -inf }
 0x416   :  { %1161 = vmax.xlane.f32.xlu1 %v1160_v38  ;;  %v2063_v39 = vpop.f32.mrf.mxu1 }
 0x427   :  { %1246 = vrot.lane.b32.xlu1 %v2303_v25, %s2190_s27 }
 0x42b   :  { %969 = vrot.lane.b32.xlu1 %v795_v33, %s2193_s6 }
 0x42f   :  { %1244 = vrot.lane.b32.xlu1 %v2298_v21, %s2190_s27 }
 0x433   :  { %1410 = vrot.lane.b32.xlu1 %v2298_v21, %s2189_s2 }
 0x437   :  { %1575 = vrot.lane.b32.xlu1 %v2298_v21, %s2191_s28  ;;  %v2411_v21 = vld [vmem:[%s2535_s3 + $0x80] sm:$0xff] }
 0x438   :  { %2047 = vmatpush3.msra.mxu0 %v2411_v21 }
 0x439   :  { %2048 = vmatprep.subr.mxu0 %v2187_v12 }
 0x43a   :  { %2049 = vmatpush3.msra.mxu0 %v2418_v43 }
 0x43b   :  { %2050 = vmatprep.subr.mxu0 %v2187_v12 }
 0x43c   :  { %2051 = vmatpush3.msra.mxu0 %v38_v49 }
 0x43d   :  { %2052 = vmatprep.subr.mxu0 %v2187_v12 }
 0x43e   :  { %2053 = vmatpush3.msra.mxu0 %v37_v50 }
 0x43f   :  { %2054 = vmatprep.subr.mxu0 %v2187_v12 }
 0x440   :  { %2055 = vmatpush3.msra.mxu0 %v36_v51 }
 0x441   :  { %2079 = vmatprep.subr.mxu0 %v2187_v12 }
 0x47b   :  { %v966_v53 = vpop.permute.xlu0 %965 }
 0x47c   :  { %v976_v56 = vsel %vm306_vm2, %v464_v28, %v966_v53 }
 0x49f   :  { %v1162_v44 = vpop.xlane.xlu1 %1161 }
 0x4a0   :  { %v1163_v45 = vsub.f32 %v1156_v37, %v1162_v44 }
 0x4a2   :  { %v1164_v46 = vmul.f32 1.442695, %v1163_v45 }
 0x4a3   :  { %v1247_v52 = vpop.permute.xlu1 %1246 }
 0x4a4   :  { %2145 = vpow2.f32 %v1164_v46 }
 0x4a7   :  { %v970_v54 = vpop.permute.xlu1 %969 }
 0x4a8   :  { %v977_v58 = vsel %vm54_vm0, %v976_v56, %v970_v54 }
 0x4ab   :  { %v1245_v57 = vpop.permute.xlu1 %1244 }
 0x4af   :  { %v1411_v61 = vpop.permute.xlu1 %1410 }
 0x4b1   :  { %v2146_v47 = vpop.eup %2145 }
 0x4b2   :  { %v1166_v48 = vsel %vm383_vm3, %v2146_v47, 0.0 }
 0x4b3   :  { %1167 = vadd.xlane.f32.xlu0 %v1166_v48  ;;  %v1576_v0 = vpop.permute.xlu1 %1575 }
 0x4c9   :  { %973 = vrot.lane.b32.xlu0 %v960_v35, %s2194_s21 }
 0x4cd   :  { %1412 = vrot.lane.b32.xlu0 %v2303_v25, %s2189_s2 }
 0x4d1   :  { %1577 = vrot.lane.b32.xlu0 %v2303_v25, %s2191_s28 }
 0x53c   :  { %v1168_v55 = vpop.xlane.xlu0 %1167 }
 0x53d   :  { %2147 = vrcp.f32 %v1168_v55 }
 0x540   :  { %v974_v59 = vpop.permute.xlu0 %973 }
 0x541   :  { %v979_v60 = vsel %vm978_vm4, %v977_v58, %v974_v59 }
 0x542   :  { %2057 = vmatmul.mubr.msk.f32.vlgmr.msra.gmra.mxu0 %vm984_vm5, %v979_v60 }
 0x543   :  { %2081 = vmatprep.mubr.msk.f32.mxu0 %vm2188_vm1, %v2187_v12 }
 0x544   :  { %v1413_v25 = vpop.permute.xlu0 %1412 }
 0x545   :  { %2080 = vmatpush3.xpose.msk.msra.mxu0 %vm306_vm2, %v1413_v25 }
 0x546   :  { %2089 = vmatprep.subr.mxu0 %v2187_v12 }
 0x548   :  { %v1578_v62 = vpop.permute.xlu0 %1577  ;;  %2082 = vmatmul.mubr.msk.f32.vlgmr.msra.gmra.mxu0 %vm306_vm2, %v1411_v61 }
 0x549   :  { %2090 = vmatpush3.xpose.msk.msra.mxu0 %vm306_vm2, %v1578_v62  ;;  %2091 = vmatprep.mubr.msk.f32.mxu0 %vm2188_vm1, %v2187_v12 }
 0x54a   :  { %v2148_v63 = vpop.eup %2147  ;;  %2099 = vmatprep.subr.mxu0 %v2187_v12 }
 0x54b   :  { %v1170_v1 = vmul.f32 %v2148_v63, %v2146_v47 }
 0x54c   :  { %2092 = vmatmul.mubr.msk.f32.vlgmr.msra.gmra.mxu0 %vm306_vm2, %v1576_v0 }
 0x54d   :  { %2067 = vmatmul.mubr.msk.f32.vlgmr.msra.gmra.mxu1 %vm383_vm3, %v1170_v1  ;;  %2100 = vmatpush3.msra.mxu0 %v2392_v40 }
 0x54e   :  { %2070 = vmatpush3.xpose.msk.msra.mxu1 %vm306_vm2, %v1247_v52  ;;  %2071 = vmatprep.mubr.msk.f32.mxu1 %vm2188_vm1, %v2187_v12  ;;  %v1882_v52 = vld [vmem:[%s2535_s3 + $0xa3] ss:$0 sm:$0xff] }
 0x54f   :  { %2074 = vmatprep.subr.mxu1 %v2187_v12  ;;  %2101 = vmatprep.subr.mxu0 %v2187_v12 }
 0x550   :  { %2102 = vmatpush3.msra.mxu0 %v2397_v41  ;;  %2115 = vmatprep.mubr.msk.f32.mxu0 %vm2188_vm1, %v2187_v12 }
 0x551   :  { %2072 = vmatmul.mubr.msk.f32.vlgmr.msra.gmra.mxu1 %vm306_vm2, %v1245_v57  ;;  %2103 = vmatprep.subr.mxu0 %v2187_v12 }
 0x552   :  { %2076 = vmatprep.mubr.msk.f32.mxu1 %vm2188_vm1, %v2187_v12  ;;  %2104 = vmatpush3.msra.mxu0 %v2404_v42 }
 0x553   :  { %2105 = vmatprep.subr.mxu0 %v2187_v12 }
 0x554   :  { %2106 = vmatpush3.msra.mxu0 %v2411_v21 }
 0x555   :  { %2107 = vmatprep.subr.mxu0 %v2187_v12 }
 0x556   :  { %2108 = vmatpush3.msra.mxu0 %v2418_v43 }
 0x557   :  { %2109 = vmatprep.subr.mxu0 %v2187_v12 }
 0x558   :  { %2110 = vmatpush3.msra.mxu0 %v38_v49 }
 0x559   :  { %2111 = vmatprep.subr.mxu0 %v2187_v12 }
 0x55a   :  { %2112 = vmatpush3.msra.mxu0 %v37_v50 }
 0x55b   :  { %2113 = vmatprep.subr.mxu0 %v2187_v12 }
 0x55c   :  { %2114 = vmatpush3.msra.mxu0 %v36_v51 }
 0x602   :  { %v2478_v3 = vpop.f32.mrf.mxu0 }
 0x604   :  { %v2058_v4 = vpop.f32.mrf.mxu0 }
 0x608   :  { %v1484_v6 = vpop.f32.mrf.mxu0 }
 0x609   :  { %v1488_v7 = vsel %vm383_vm3, %v1484_v6, -inf }
 0x60a   :  { %1489 = vmax.xlane.f32.xlu1 %v1488_v7  ;;  %v2083_v8 = vpop.f32.mrf.mxu0 }
 0x60c   :  { %v1649_v9 = vpop.f32.mrf.mxu0 }
 0x60d   :  { %v2481_v10 = vpop.f32.mrf.mxu1  ;;  %v1653_v17 = vsel %vm383_vm3, %v1649_v9, -inf }
 0x60e   :  { %v2093_v11 = vpop.f32.mrf.mxu0 }
 0x60f   :  { %v2068_v13 = vpop.f32.mrf.mxu1  ;;  %v1884_v11 = vld [vmem:[%s2535_s3 + $0xa4] ss:$0 sm:$0xff] }
 0x611   :  { %v1318_v14 = vpop.f32.mrf.mxu1 }
 0x612   :  { %v1322_v15 = vsel %vm383_vm3, %v1318_v14, -inf }
 0x613   :  { %1323 = vmax.xlane.f32.xlu0 %v1322_v15  ;;  %v2073_v16 = vpop.f32.mrf.mxu1 }
 0x617   :  { %1654 = vmax.xlane.f32.xlu0 %v1653_v17 }
 0x693   :  { %v1490_v18 = vpop.xlane.xlu1 %1489 }
 0x694   :  { %v1491_v19 = vsub.f32 %v1484_v6, %v1490_v18 }
 0x696   :  { %v1492_v20 = vmul.f32 1.442695, %v1491_v19 }
 0x698   :  { %2149 = vpow2.f32 %v1492_v20 }
 0x69c   :  { %v1324_v22 = vpop.xlane.xlu0 %1323 }
 0x69d   :  { %v1325_v23 = vsub.f32 %v1318_v14, %v1324_v22  ;;  %v1885_v14 = vld [vmem:[%s2535_s3 + $0xa5] ss:$0 sm:$0xff] }
 0x69f   :  { %v1326_v27 = vmul.f32 1.442695, %v1325_v23 }
 0x6a0   :  { %v1655_v24 = vpop.xlane.xlu0 %1654 }
 0x6a1   :  { %v1656_v26 = vsub.f32 %v1649_v9, %v1655_v24 }
 0x6a3   :  { %v1657_v28 = vmul.f32 1.442695, %v1656_v26 }
 0x6a5   :  { %v2150_v29 = vpop.eup %2149  ;;  %2151 = vpow2.f32 %v1657_v28 }
 0x6a6   :  { %v1494_v30 = vsel %vm383_vm3, %v2150_v29, 0.0  ;;  %2153 = vpow2.f32 %v1326_v27 }
 0x6a7   :  { %1495 = vadd.xlane.f32.xlu1 %v1494_v30 }
 0x6b2   :  { %v2152_v32 = vpop.eup %2151 }
 0x6b3   :  { %v1659_v33 = vsel %vm383_vm3, %v2152_v32, 0.0  ;;  %v2154_v34 = vpop.eup %2153 }
 0x6b4   :  { %1660 = vadd.xlane.f32.xlu0 %v1659_v33  ;;  %v1328_v35 = vsel %vm383_vm3, %v2154_v34, 0.0 }
 0x6b8   :  { %1334 = vrot.lane.b32.xlu1 %v2319_v31, %s2190_s27  ;;  %1329 = vadd.xlane.f32.xlu0 %v1328_v35  ;;  %s2195_s27 = smov [#allocation2]  }
 0x6bc   :  { %1664 = vrot.lane.b32.xlu1 %v2319_v31, %s2191_s28  ;;  %s1850_s28 = sshll.u32 %s2195_s27, 4  ;;  %s1851_s28 = int_to_ptr.vmem [resolvable:$true] %s1850_s28 }
 0x6bd   :  { %s2165_s3 = scalar_lea.vmem %s1851_s28, 256  ;;  %p2170_p1 = scmp.lt.s32.totalorder %s1851_s28, %s1851_s28 }
 0x6be   :  { %p2166_p0 = scmp.ne.s32.totalorder %s1851_s28, %s2165_s3  ;;  %p2171_p2 = scmp.lt.s32.totalorder %s2165_s3, %s2165_s3 }
 0x6c0   :  { %p2172_p3 = por %p2171_p2, %p2170_p1 }
 0x6c2   :  { %p2173_p4 = pnand %p2172_p3, %p2166_p0 }
 0x6ce   :  { %1499 = vrot.lane.b32.xlu0 %v2319_v31, %s2189_s2 }
 0x730   :  { %v1496_v36 = vpop.xlane.xlu1 %1495 }
 0x734   :  { %v1335_v37 = vpop.permute.xlu1 %1334 }
 0x735   :  { %2075 = vmatpush3.msra.mxu1 %v1335_v37 }
 0x736   :  { %2084 = vmatprep.subr.mxu1 %v2187_v12 }
 0x738   :  { %v1665_v44 = vpop.permute.xlu1 %1664 }
 0x73d   :  { %v1661_v38 = vpop.xlane.xlu0 %1660 }
 0x741   :  { %v1330_v39 = vpop.xlane.xlu0 %1329 }
 0x742   :  { %2155 = vrcp.f32 %v1330_v39 }
 0x743   :  { %2157 = vrcp.f32 %v1496_v36 }
 0x744   :  { %2159 = vrcp.f32 %v1661_v38 }
 0x745   :  { %v1500_v21 = vpop.permute.xlu0 %1499 }
 0x74f   :  { %v2156_v40 = vpop.eup %2155 }
 0x750   :  { %v1332_v41 = vmul.f32 %v2156_v40, %v2154_v34  ;;  %v2158_v42 = vpop.eup %2157 }
 0x751   :  { %v1498_v31 = vmul.f32 %v2158_v42, %v2150_v29  ;;  %v2160_v43 = vpop.eup %2159 }
 0x752   :  { %2077 = vmatmul.mubr.msk.f32.vlgmr.msra.gmra.mxu1 %vm383_vm3, %v1332_v41  ;;  %v1663_v45 = vmul.f32 %v2160_v43, %v2152_v32 }
 0x753   :  { %2085 = vmatpush3.msra.mxu1 %v1500_v21  ;;  %2086 = vmatprep.mubr.msk.f32.mxu1 %vm2188_vm1, %v2187_v12 }
 0x754   :  { %2094 = vmatprep.subr.mxu1 %v2187_v12 }
 0x756   :  { %2087 = vmatmul.mubr.msk.f32.vlgmr.msra.gmra.mxu1 %vm383_vm3, %v1498_v31 }
 0x757   :  { %2095 = vmatpush3.msra.mxu1 %v1665_v44  ;;  %2096 = vmatprep.mubr.msk.f32.mxu1 %vm2188_vm1, %v2187_v12  ;;  %v1055_v12 = vadd.f32 %v1882_v52, %v2478_v3 }
 0x759   :  { %v1058_v53 = vadd.f32 %v1055_v12, %v2232_v2 }
 0x75a   :  { %2097 = vmatmul.mubr.msk.f32.vlgmr.msra.gmra.mxu1 %vm383_vm3, %v1663_v45 }
 0x75b   :  { %v1059_v54 = vsel %vm54_vm0, %v1058_v53, 0.0 }
 0x812   :  { %v1406_v46 = vpop.f32.mrf.mxu1 }
 0x813   :  { %1741 = vrot.lane.b32.xlu1 %v1406_v46, %s2192_s5 }
 0x814   :  { %v2078_v47 = vpop.f32.mrf.mxu1 }
 0x816   :  { %v1571_v48 = vpop.f32.mrf.mxu1 }
 0x817   :  { %1745 = vrot.lane.b32.xlu0 %v1571_v48, %s2193_s6 }
 0x818   :  { %v2088_v49 = vpop.f32.mrf.mxu1 }
 0x81a   :  { %v1736_v50 = vpop.f32.mrf.mxu1 }
 0x81b   :  { %1749 = vrot.lane.b32.xlu1 %v1736_v50, %s2194_s21 }
 0x81c   :  { %v2098_v51 = vpop.f32.mrf.mxu1 }
 0x836   :  { %1060 = vadd.xlane.f32.xlu0 %v1059_v54 }
 0x885   :  { %v1742_v55 = vpop.permute.xlu1 %1741 }
 0x886   :  { %v1752_v57 = vsel %vm306_vm2, %v2481_v10, %v1742_v55 }
 0x889   :  { %v1746_v56 = vpop.permute.xlu0 %1745 }
 0x88a   :  { %v1753_v58 = vsel %vm54_vm0, %v1752_v57, %v1746_v56 }
 0x88d   :  { %v1750_v59 = vpop.permute.xlu1 %1749 }
 0x88e   :  { %v1754_v60 = vsel %vm978_vm4, %v1753_v58, %v1750_v59 }
 0x88f   :  { %2116 = vmatmul.mubr.msk.f32.vlgmr.msra.gmra.mxu0 %vm984_vm5, %v1754_v60 }
 0x8bf   :  { %v1061_v25 = vpop.xlane.xlu0 %1060 }
 0x8c0   :  { %v1063_v61 = vmul.f32 0.03125, %v1061_v25 }
 0x8c2   :  { %v1064_v62 = vsub.f32 %v1058_v53, %v1063_v61 }
 0x8c4   :  { %v1065_v63 = vmul.f32 %v1064_v62, %v1064_v62 }
 0x8c6   :  { %v1066_v2 = vsel %vm54_vm0, %v1065_v63, 0.0 }
 0x8c7   :  { %1067 = vadd.xlane.f32.xlu0 %v1066_v2 }
 0x94f   :  { %v1824_v0 = vpop.f32.mrf.mxu0 }
 0x950   :  { %v1825_v1 = vadd.f32 %v1882_v52, %v1824_v0  ;;  %v1068_v3 = vpop.xlane.xlu0 %1067 }
 0x951   :  { %v1069_v4 = vmul.f32 0.03125, %v1068_v3  ;;  %v2117_v6 = vpop.f32.mrf.mxu0 }
 0x952   :  { %v1828_v7 = vadd.f32 %v1825_v1, %v2245_v5 }
 0x953   :  { %v1070_v8 = vadd.f32 1e-05, %v1069_v4 }
 0x954   :  { %v1829_v9 = vsel %vm54_vm0, %v1828_v7, 0.0 }
 0x955   :  { %2161 = vrsqrt.f32 %v1070_v8  ;;  %1830 = vadd.xlane.f32.xlu1 %v1829_v9 }
 0x962   :  { %v2162_v10 = vpop.eup %2161 }
 0x963   :  { %v1072_v13 = vmul.f32 %v2162_v10, %v1064_v62 }
 0x965   :  { %v1077_v15 = vmul.f32 %v1884_v11, %v1072_v13 }
 0x967   :  { %v1082_v16 = vadd.f32 %v1885_v14, %v1077_v15 }
 0x969   :  { %1083 = vst.msk [vmem:[#allocation2] sm:$0xff] %vm54_vm0, %v1082_v16 }
 0x9de   :  { %v1831_v5 = vpop.xlane.xlu1 %1830 }
 0x9df   :  { %v1832_v17 = vmul.f32 0.03125, %v1831_v5 }
 0x9e1   :  { %v1833_v18 = vsub.f32 %v1828_v7, %v1832_v17 }
 0x9e3   :  { %v1834_v19 = vmul.f32 %v1833_v18, %v1833_v18 }
 0x9e5   :  { %v1835_v20 = vsel %vm54_vm0, %v1834_v19, 0.0 }
 0x9e6   :  { %1836 = vadd.xlane.f32.xlu0 %v1835_v20 }
 0xa6f   :  { %v1837_v22 = vpop.xlane.xlu0 %1836 }
 0xa70   :  { %v1838_v23 = vmul.f32 0.03125, %v1837_v22 }
 0xa72   :  { %v1839_v24 = vadd.f32 1e-05, %v1838_v23 }
 0xa74   :  { %2163 = vrsqrt.f32 %v1839_v24 }
 0xa81   :  { %v2164_v26 = vpop.eup %2163 }
 0xa82   :  { %v1841_v27 = vmul.f32 %v2164_v26, %v1833_v18 }
 0xa84   :  { %v1842_v28 = vmul.f32 %v1884_v11, %v1841_v27 }
 0xa86   :  { %v1843_v29 = vadd.f32 %v1885_v14, %v1842_v28 }
 0xa88   :  { %1844 = vst.msk [vmem:[#allocation2 + $0x8] sm:$0xff] %vm54_vm0, %v1843_v29 }
 0xa89   :  { %2176 = shalt.err (!%p2173_p4)
}
 0xa8a   :  { %s2196_s29 = smov 128   ;;  %s2197_s30 = smov 8  }
 0xa8b   :  { %1856 = dma.vmem_to_hbm [thread:$0]  %s1851_s28, 256, %s2536_s4, [#allocation3], %s2196_s29, %s2196_s29, %s2197_s30  }
 0xa8c   :  { %2185 = dma.done.wait [#allocation3], 256  }
 0xa8d   :  { %2186 = vsyncadd [#allocation3], 4294967040 }
 0xa8e   :  { %1860 = vsyncpa [#allocation3], 1 }

</bundles_post_ra>
